<compile_context>
chip_gen: v7x
topology: tpu7x:2x2x1
jax: 0.10.0
libtpu: 0.0.40
codegen_flags: <defaults>
</compile_context>

<pallas_src>
import functools

import jax
import jax.numpy as jnp
from jax import lax
from jax.experimental import pallas as pl
from jax.experimental.pallas import tpu as pltpu

_MIB = 1024 * 1024


def _sdpa_kernel(q_ref, k_ref, v_ref, ctx_ref, attn_ref, *, scale, num_valid_k):
    q = q_ref[...]                      # (bt, tq, D)
    if scale is not None:
        # Fold the scale into q: bt*tq*D multiplies instead of bt*tq*Lk.
        q = q * jnp.asarray(scale, dtype=q.dtype)
    k = k_ref[...]                      # (bt, Lk, D)
    v = v_ref[...]                      # (bt, Lk, Dv)

    # scores[b, i, j] = sum_d q[b, i, d] * k[b, j, d]
    # Contract the last dim of both operands so K feeds the MXU in its natural
    # (Lk, D) layout (no transpose), batched over the leading dim.
    s = lax.dot_general(
        q, k,
        dimension_numbers=(((2,), (2,)), ((0,), (0,))),
        preferred_element_type=jnp.float32,
    )                                   # (bt, tq, Lk) f32

    if num_valid_k is not None and num_valid_k < s.shape[-1]:
        # Padded key columns (wrapper padded Lk up to a multiple of 128 for a
        # lane-dense attention store) get a huge negative score -> weight 0.
        col = lax.broadcasted_iota(jnp.int32, s.shape, dimension=2)
        s = jnp.where(col < num_valid_k, s, jnp.float32(-1e30))

    # Numerically stable softmax over the key axis (torch Softmax(dim=2)).
    m = jnp.max(s, axis=-1, keepdims=True)
    p = jnp.exp(s - m)
    denom = jnp.sum(p, axis=-1, keepdims=True)
    inv = pl.reciprocal(denom, approx=False)      # (bt, tq, 1): tiny cost

    # Normalize ONCE and reuse: pn feeds both the attention output and the PV
    # matmul (no second full-size live buffer, no ctx-scaling epilogue).
    pn = p * inv
    attn_ref[...] = pn.astype(attn_ref.dtype)

    ctx = lax.dot_general(
        pn.astype(v.dtype), v,
        dimension_numbers=(((2,), (1,)), ((0,), (0,))),
        preferred_element_type=jnp.float32,
    )                                   # (bt, tq, Dv) f32
    ctx_ref[...] = ctx.astype(ctx_ref.dtype)


def _tpu_vmem_capacity_bytes():
    """Best-effort per-core VMEM capacity; conservative 64 MiB fallback."""
    try:
        info = pltpu.get_tpu_info()
        cap = getattr(info, "vmem_capacity_bytes", None)
        if cap:
            return int(cap)
    except Exception:
        pass
    return 64 * _MIB


def _choose_block_q(Lq, Lk, score_budget_bytes):
    """Largest multiple-of-8 q tile keeping the f32 (block_q, Lk) score tile in budget."""
    max_rows = max(8, score_budget_bytes // (4 * max(Lk, 1)))
    max_rows = max(8, (max_rows // 8) * 8)
    if Lq <= max_rows:
        return Lq                       # block == full dim: always legal
    cap = min(max_rows, 1024)
    for t in range(cap, 7, -8):         # prefer a divisor of Lq (no ragged tail)
        if Lq % t == 0:
            return t
    return cap                          # ragged tail handled by cdiv + masked writes


def _choose_block_b(B, Lq, Lk):
    """Pack several batch elements per grid step when the per-batch work is tiny."""
    if Lq * Lk <= 128 * 128:
        for bt in (8, 4, 2, 1):
            if bt <= B and B % bt == 0:
                return bt
    return 1


def scale_dot_product_attention(q, k, v, scale=None, *, block_q=None, block_b=None,
                                out_dtype=None):
    """q: (B, Lq, D), k: (B, Lk, D), v: (B, Lk, Dv) -> (context, attention)."""
    B, Lq, D = q.shape
    _, Lk, _ = k.shape
    Dv = v.shape[-1]
    out_dtype = q.dtype if out_dtype is None else jnp.dtype(out_dtype)

    vmem_cap = _tpu_vmem_capacity_bytes()
    big_vmem = vmem_cap >= 100 * _MIB            # v5e / v6e (128 MiB) vs v7x (64 MiB)
    score_budget = (6 * _MIB) if big_vmem else (2 * _MIB)

    # Lane-dense attention writeback: pad the key axis to a multiple of 128 and
    # slice the attention slab back afterwards (masked in-kernel, see kernel).
    Lk_pad = Lk
    if Lk >= 128 and Lk % 128 != 0:
        Lk_pad = ((Lk + 127) // 128) * 128
        pad = Lk_pad - Lk
        k = jnp.pad(k, ((0, 0), (0, pad), (0, 0)))
        v = jnp.pad(v, ((0, 0), (0, pad), (0, 0)))
    num_valid_k = Lk if Lk_pad != Lk else None

    if block_q is None:
        block_q = _choose_block_q(Lq, Lk_pad, score_budget)
    if block_b is None:
        block_b = _choose_block_b(B, Lq, Lk_pad)

    grid = (pl.cdiv(B, block_b), pl.cdiv(Lq, block_q))

    # --- VMEM budgeting / pipelining decisions -------------------------------
    in_bytes = q.dtype.itemsize
    out_bytes = out_dtype.itemsize
    q_tile = block_b * block_q * D * in_bytes
    k_tile = block_b * Lk_pad * D * in_bytes
    v_tile = block_b * Lk_pad * Dv * in_bytes
    ctx_tile = block_b * block_q * Dv * out_bytes
    attn_tile = block_b * block_q * Lk_pad * out_bytes
    score_bytes = 3 * block_b * block_q * Lk_pad * 4     # s, p, pn f32 intermediates

    # K/V only change at batch-block boundaries; single-buffer them when their
    # double-buffered footprint would dominate VMEM and Lq is tiled.
    single_buffer_kv = (grid[1] >= 2) and (2 * (k_tile + v_tile) > vmem_cap // 3)
    kv_bufs = 1 if single_buffer_kv else 2
    need = (2 * q_tile + kv_bufs * (k_tile + v_tile)
            + 2 * (ctx_tile + attn_tile) + score_bytes + 4 * _MIB)
    vmem_limit = int(min(max(need, 32 * _MIB), int(vmem_cap * 0.8)))

    # With >= 2 batch blocks, shard batch (not q) across TensorCores so each
    # K/V block is fetched once per batch block per core.
    if grid[0] >= 2:
        dims = ("parallel", "arbitrary")
    else:
        dims = ("parallel", "parallel")

    kv_kwargs = {}
    if single_buffer_kv:
        kv_kwargs = dict(pipeline_mode=pl.Buffered(1))

    kernel = functools.partial(_sdpa_kernel, scale=scale, num_valid_k=num_valid_k)

    ctx, attn = pl.pallas_call(
        kernel,
        out_shape=(
            jax.ShapeDtypeStruct((B, Lq, Dv), out_dtype),
            jax.ShapeDtypeStruct((B, Lq, Lk_pad), out_dtype),
        ),
        grid_spec=pltpu.PrefetchScalarGridSpec(
            num_scalar_prefetch=0,
            grid=grid,
            in_specs=[
                pl.BlockSpec((block_b, block_q, D), lambda bi, qi: (bi, qi, 0)),
                # K/V blocks are invariant along the q-tile axis -> no re-DMA
                # between consecutive q tiles of the same batch block.
                pl.BlockSpec((block_b, Lk_pad, D), lambda bi, qi: (bi, 0, 0),
                             **kv_kwargs),
                pl.BlockSpec((block_b, Lk_pad, Dv), lambda bi, qi: (bi, 0, 0),
                             **kv_kwargs),
            ],
            out_specs=[
                pl.BlockSpec((block_b, block_q, Dv), lambda bi, qi: (bi, qi, 0)),
                pl.BlockSpec((block_b, block_q, Lk_pad), lambda bi, qi: (bi, qi, 0)),
            ],
        ),
        compiler_params=pltpu.CompilerParams(
            dimension_semantics=dims,
            vmem_limit_bytes=vmem_limit,
        ),
    )(q, k, v)

    if Lk_pad != Lk:
        attn = attn[:, :, :Lk]
    return ctx, attn


def _reference(q, k, v, scale=None):
    s = jnp.einsum("bqd,bkd->bqk", q, k)
    if scale is not None:
        s = s * scale
    attn = jax.nn.softmax(s, axis=2)
    ctx = jnp.einsum("bqk,bkd->bqd", attn, v)
    return ctx, attn


if __name__ == "__main__":
    key = jax.random.PRNGKey(0)

    def run_case(B, Lq, Lk, D, Dv, **kw):
        kq, kk, kv = jax.random.split(jax.random.fold_in(key, B * 10000 + Lq + Lk), 3)
        q = jax.random.normal(kq, (B, Lq, D), dtype=jnp.float32)
        k = jax.random.normal(kk, (B, Lk, D), dtype=jnp.float32)
        v = jax.random.normal(kv, (B, Lk, Dv), dtype=jnp.float32)
        scale = 1.0 / (D ** 0.5)

        ctx, attn = scale_dot_product_attention(q, k, v, scale=scale, **kw)
        jax.block_until_ready((ctx, attn))

        ctx_ref, attn_ref = _reference(q, k, v, scale=scale)
        assert jnp.allclose(ctx, ctx_ref, atol=1e-4, rtol=1e-4), "ctx mismatch"
        assert jnp.allclose(attn, attn_ref, atol=1e-4, rtol=1e-4), "attn mismatch"

    # Tiny shapes implied by the module spec: whole batch packed into one step.
    run_case(B=2, Lq=8, Lk=8, D=32, Dv=32)
    # Moderate shapes exercising Lq tiling + q-axis "arbitrary" semantics.
    run_case(B=2, Lq=256, Lk=256, D=64, Dv=64, block_q=128, block_b=1)
    # Lk not a multiple of 128: exercises lane-dense padding + in-kernel masking.
    run_case(B=2, Lq=64, Lk=192, D=32, Dv=32)

    print("KERNEL_OK")
</pallas_src>

<mosaic_0001>
module attributes {stable_mosaic.version = 11 : i64} {
  func.func @_sdpa_kernel(%arg0: i32, %arg1: i32, %arg2: memref<2x8x32xf32, #tpu.memory_space<vmem>>, %arg3: memref<2x8x32xf32, #tpu.memory_space<vmem>>, %arg4: memref<2x8x32xf32, #tpu.memory_space<vmem>>, %arg5: memref<2x8x32xf32, #tpu.memory_space<vmem>>, %arg6: memref<2x8x8xf32, #tpu.memory_space<vmem>>) attributes {dimension_semantics = [#tpu.dimension_semantics<parallel>, #tpu.dimension_semantics<parallel>], iteration_bounds = array<i64: 1, 1>, scalar_prefetch = 0 : i64, scratch_operands = 0 : i64, tpu.core_type = #tpu.core_type<tc>, window_params = [{transform_indices = @transform_0, window_bounds = array<i64: 2, 8, 32>}, {transform_indices = @transform_1, window_bounds = array<i64: 2, 8, 32>}, {transform_indices = @transform_2, window_bounds = array<i64: 2, 8, 32>}, {transform_indices = @transform_3, window_bounds = array<i64: 2, 8, 32>}, {transform_indices = @transform_4, window_bounds = array<i64: 2, 8, 8>}]} {
    %c0 = arith.constant 0 : index
    %c0_0 = arith.constant 0 : index
    %c0_1 = arith.constant 0 : index
    %0 = vector.load %arg2[%c0, %c0_0, %c0_1] : memref<2x8x32xf32, #tpu.memory_space<vmem>>, vector<2x8x32xf32>
    %cst = arith.constant 0.176776692 : f32
    %1 = vector.broadcast %cst : f32 to vector<2x8x32xf32>
    %2 = arith.mulf %0, %1 : vector<2x8x32xf32>
    %c0_2 = arith.constant 0 : index
    %c0_3 = arith.constant 0 : index
    %c0_4 = arith.constant 0 : index
    %3 = vector.load %arg3[%c0_2, %c0_3, %c0_4] : memref<2x8x32xf32, #tpu.memory_space<vmem>>, vector<2x8x32xf32>
    %c0_5 = arith.constant 0 : index
    %c0_6 = arith.constant 0 : index
    %c0_7 = arith.constant 0 : index
    %4 = vector.load %arg4[%c0_5, %c0_6, %c0_7] : memref<2x8x32xf32, #tpu.memory_space<vmem>>, vector<2x8x32xf32>
    %cst_8 = arith.constant dense<0.000000e+00> : vector<2x8x8xf32>
    %5 = tpu.matmul %2, %3, %cst_8 {dimension_numbers = #tpu.dot_dimension_numbers<[2], [2], [1], [1], [0, 0, 0, 1, 1, 1], [0], [0]>} : vector<2x8x32xf32>, vector<2x8x32xf32>, vector<2x8x8xf32> -> vector<2x8x8xf32>
    %cst_9 = arith.constant dense<0xFF800000> : vector<2x8xf32>
    %6 = vector.multi_reduction <maximumf>, %5, %cst_9 [2] : vector<2x8x8xf32> to vector<2x8xf32>
    %7 = vector.shape_cast %6 : vector<2x8xf32> to vector<2x8x1xf32>
    %8 = vector.broadcast %7 : vector<2x8x1xf32> to vector<2x8x8xf32>
    %9 = arith.subf %5, %8 : vector<2x8x8xf32>
    %10 = math.exp %9 : vector<2x8x8xf32>
    %cst_10 = arith.constant dense<0.000000e+00> : vector<2x8xf32>
    %11 = vector.multi_reduction <add>, %10, %cst_10 [2] : vector<2x8x8xf32> to vector<2x8xf32>
    %12 = vector.shape_cast %11 : vector<2x8xf32> to vector<2x8x1xf32>
    %13 = tpu.reciprocal %12 : vector<2x8x1xf32> -> vector<2x8x1xf32>
    %14 = vector.broadcast %13 : vector<2x8x1xf32> to vector<2x8x8xf32>
    %15 = arith.mulf %10, %14 : vector<2x8x8xf32>
    %c0_11 = arith.constant 0 : index
    %c0_12 = arith.constant 0 : index
    %c0_13 = arith.constant 0 : index
    %16 = vector.load %arg6[%c0_11, %c0_12, %c0_13] : memref<2x8x8xf32, #tpu.memory_space<vmem>>, vector<2x8x8xf32>
    tpu.vector_store %arg6[%c0_11, %c0_12, %c0_13], %15 {strides = array<i32>} : memref<2x8x8xf32, #tpu.memory_space<vmem>>, vector<2x8x8xf32>,
    %cst_14 = arith.constant dense<0.000000e+00> : vector<2x8x32xf32>
    %17 = tpu.matmul %15, %4, %cst_14 {dimension_numbers = #tpu.dot_dimension_numbers<[2], [1], [1], [2], [0, 0, 0, 1, 1, 2], [0], [0]>} : vector<2x8x8xf32>, vector<2x8x32xf32>, vector<2x8x32xf32> -> vector<2x8x32xf32>
    %c0_15 = arith.constant 0 : index
    %c0_16 = arith.constant 0 : index
    %c0_17 = arith.constant 0 : index
    %18 = vector.load %arg5[%c0_15, %c0_16, %c0_17] : memref<2x8x32xf32, #tpu.memory_space<vmem>>, vector<2x8x32xf32>
    tpu.vector_store %arg5[%c0_15, %c0_16, %c0_17], %17 {strides = array<i32>} : memref<2x8x32xf32, #tpu.memory_space<vmem>>, vector<2x8x32xf32>,
    return
  }
  func.func @transform_0(%arg0: i32, %arg1: i32) -> (i32, i32, i32) {
    %c0_i32 = arith.constant 0 : i32
    %c0_i32_0 = arith.constant 0 : i32
    return %arg0, %arg1, %c0_i32 : i32, i32, i32
  }
  func.func @transform_1(%arg0: i32, %arg1: i32) -> (i32, i32, i32) {
    %c0_i32 = arith.constant 0 : i32
    %c0_i32_0 = arith.constant 0 : i32
    %c0_i32_1 = arith.constant 0 : i32
    return %arg0, %c0_i32, %c0_i32_0 : i32, i32, i32
  }
  func.func @transform_2(%arg0: i32, %arg1: i32) -> (i32, i32, i32) {
    %c0_i32 = arith.constant 0 : i32
    %c0_i32_0 = arith.constant 0 : i32
    %c0_i32_1 = arith.constant 0 : i32
    return %arg0, %c0_i32, %c0_i32_0 : i32, i32, i32
  }
  func.func @transform_3(%arg0: i32, %arg1: i32) -> (i32, i32, i32) {
    %c0_i32 = arith.constant 0 : i32
    %c0_i32_0 = arith.constant 0 : i32
    return %arg0, %arg1, %c0_i32 : i32, i32, i32
  }
  func.func @transform_4(%arg0: i32, %arg1: i32) -> (i32, i32, i32) {
    %c0_i32 = arith.constant 0 : i32
    %c0_i32_0 = arith.constant 0 : i32
    return %arg0, %arg1, %c0_i32 : i32, i32, i32
  }
}

</mosaic_0001>

<bundles_post_ra>
// kernel: tpu_custom_call.1
= control target key start
LH: loop header
LB: loop body
LE: loop exit
PB: predicated region body
PF: predicated region fallthrough
CT: control target
= control target key end

     0   :  { %10 = vsyncpa [#allocation3], 0  ;;  %s730_s0 = inlined_call_operand.hbm [shape: f32[2,8,32], index: 0, kind: input, shape index: {}]   ;;  %s731_s1 = inlined_call_operand.hbm [shape: f32[2,8,32], index: 1, kind: input, shape index: {}]   ;;  %s732_s2 = inlined_call_operand.hbm [shape: f32[2,8,32], index: 2, kind: input, shape index: {}]   ;;  %s733_s3 = inlined_call_operand.hbm [shape: f32[2,8,32], index: 3, kind: output, shape index: {0}]   ;;  %s734_s4 = inlined_call_operand.hbm [shape: f32[2,8,8], index: 4, kind: output, shape index: {1}]  }
   0x1   :  { %11 = vsyncpa [#allocation6], 0 }
   0x2   :  { %12 = vsyncpa [#allocation4], 0 }
   0x3   :  { %13 = vsyncpa [#allocation10], 0  ;;  %s596_s15 = smov [#allocation5]   ;;  %s597_s17 = smov [#allocation2]  }
   0x4   :  { %s31_s16 = sshll.u32 %s596_s15, 4  ;;  %s19_s18 = sshll.u32 %s597_s17, 4  ;;  %s32_s16 = int_to_ptr.vmem [resolvable:$true] %s31_s16  ;;  %s630_s18 = int_to_ptr.vmem [resolvable:$true] %s19_s18 }
   0x5   :  { %s478_s21 = scalar_lea.hbm %s731_s1, 256 }
   0x6   :  { %p479_p0 = scmp.ne.s32.totalorder %s731_s1, %s478_s21  ;;  %p482_p1 = scmp.lt.u32.totalorder %s478_s21, %s731_s1 }
   0x8   :  { %p484_p2 = pnand %p482_p1, %p479_p0 }
   0xa   :  { %487 = shalt.err (!%p484_p2)
}
   0xb   :  { %s488_s26 = scalar_lea.vmem %s32_s16, 256  ;;  %p493_p4 = scmp.lt.s32.totalorder %s32_s16, %s32_s16 }
   0xc   :  { %p489_p3 = scmp.ne.s32.totalorder %s32_s16, %s488_s26  ;;  %p494_p5 = scmp.lt.s32.totalorder %s488_s26, %s488_s26 }
   0xe   :  { %p495_p6 = por %p494_p5, %p493_p4 }
  0x10   :  { %p496_p7 = pnand %p495_p6, %p489_p3 }
  0x12   :  { %499 = shalt.err (!%p496_p7)
}
  0x13   :  { %s598_s27 = smov 128   ;;  %s599_s28 = smov 8  }
  0x14   :  { %37 = dma.hbm_to_vmem [thread:$0]  %s731_s1, 256, %s32_s16, [#allocation6], %s598_s27, %s598_s27, %s599_s28  }
  0x15   :  { %s500_s7 = scalar_lea.hbm %s730_s0, 256 }
  0x16   :  { %p501_p8 = scmp.ne.s32.totalorder %s730_s0, %s500_s7  ;;  %p504_p9 = scmp.lt.u32.totalorder %s500_s7, %s730_s0 }
  0x18   :  { %p506_p10 = pnand %p504_p9, %p501_p8 }
  0x1a   :  { %509 = shalt.err (!%p506_p10)
}
  0x1b   :  { %s510_s12 = scalar_lea.vmem %s630_s18, 256  ;;  %p515_p12 = scmp.lt.s32.totalorder %s630_s18, %s630_s18 }
  0x1c   :  { %p511_p11 = scmp.ne.s32.totalorder %s630_s18, %s510_s12  ;;  %p516_p13 = scmp.lt.s32.totalorder %s510_s12, %s510_s12 }
  0x1e   :  { %p517_p0 = por %p516_p13, %p515_p12 }
  0x20   :  { %p518_p1 = pnand %p517_p0, %p511_p11 }
  0x22   :  { %521 = shalt.err (!%p518_p1)
}
  0x23   :  { %25 = dma.hbm_to_vmem [thread:$0]  %s730_s0, 256, %s630_s18, [#allocation3], %s598_s27, %s598_s27, %s599_s28  }
  0x24   :  { %s600_s14 = smov [#allocation7]   ;;  %s522_s19 = scalar_lea.hbm %s732_s2, 256 }
  0x25   :  { %s43_s15 = sshll.u32 %s600_s14, 4  ;;  %p523_p2 = scmp.ne.s32.totalorder %s732_s2, %s522_s19  ;;  %s44_s15 = int_to_ptr.vmem [resolvable:$true] %s43_s15 }
  0x26   :  { %p526_p3 = scmp.lt.u32.totalorder %s522_s19, %s732_s2 }
  0x28   :  { %p528_p4 = pnand %p526_p3, %p523_p2 }
  0x2a   :  { %531 = shalt.err (!%p528_p4)
}
  0x2b   :  { %s532_s24 = scalar_lea.vmem %s44_s15, 256  ;;  %p537_p6 = scmp.lt.s32.totalorder %s44_s15, %s44_s15 }
  0x2c   :  { %p533_p5 = scmp.ne.s32.totalorder %s44_s15, %s532_s24  ;;  %p538_p7 = scmp.lt.s32.totalorder %s532_s24, %s532_s24 }
  0x2e   :  { %p539_p8 = por %p538_p7, %p537_p6 }
  0x30   :  { %p540_p9 = pnand %p539_p8, %p533_p5 }
  0x32   :  { %543 = shalt.err (!%p540_p9)
}
  0x33   :  { %49 = dma.hbm_to_vmem [thread:$0]  %s732_s2, 256, %s44_s15, [#allocation6], %s598_s27, %s598_s27, %s599_s28  }
  0x34   :  { %588 = dma.done.wait [#allocation3], 256  }
  0x35   :  { %589 = vsyncadd [#allocation3], 4294967040 }
  0x36   :  { %590 = dma.done.wait [#allocation6], 512  }
  0x37   :  { %591 = vsyncadd [#allocation6], 4294966784  ;;  %v601_v0 = vmov 0.0   ;;  %vm602_vm0 = vmmov 0   ;;  %vm67_vm1 = vcmask 261120   ;;  %v63_v1 = vld [vmem:[#allocation5] sm:$0xff] }
  0x38   :  { %441 = vmatprep.subr.mxu0 %v601_v0  ;;  %443 = vmatprep.mubr.msk.f32.mxu0 %vm602_vm0, %v601_v0  ;;  %v59_v2 = vld [vmem:[#allocation2] sm:$0xff]  ;;  %v64_v3 = vld [vmem:[#allocation5 + $0x8] sm:$0xff]  ;;  %v60_v5 = vld [vmem:[#allocation2 + $0x8] sm:$0xff]  ;;  %vm220_vm2 = vcmask 64512   ;;  %s603_s2 = smov [#allocation9]  }
  0x39   :  { %446 = vmatprep.subr.mxu1 %v601_v0  ;;  %448 = vmatprep.mubr.msk.f32.mxu1 %vm602_vm0, %v601_v0  ;;  %v61_v4 = vmul.f32 0.17677669, %v59_v2  ;;  %v62_v6 = vmul.f32 0.17677669, %v60_v5  ;;  %v65_v23 = vld [vmem:[#allocation7] sm:$0xff]  ;;  %v66_v24 = vld [vmem:[#allocation7 + $0x8] sm:$0xff] }
  0x3a   :  { %442 = vmatpush3.xpose.msk.msra.mxu0 %vm67_vm1, %v63_v1  ;;  %447 = vmatpush3.xpose.msk.msra.mxu1 %vm67_vm1, %v64_v3  ;;  %s410_s25 = sshll.u32 %s603_s2, 4  ;;  %s411_s25 = int_to_ptr.vmem [resolvable:$true] %s410_s25 }
  0x3b   :  { %451 = vmatprep.subr.mxu0 %v601_v0  ;;  %456 = vmatprep.subr.mxu1 %v601_v0  ;;  %s544_s26 = scalar_lea.vmem %s411_s25, 256  ;;  %p549_p11 = scmp.lt.s32.totalorder %s411_s25, %s411_s25 }
  0x3c   :  { %p545_p10 = scmp.ne.s32.totalorder %s411_s25, %s544_s26  ;;  %p550_p12 = scmp.lt.s32.totalorder %s544_s26, %s544_s26 }
  0x3d   :  { %444 = vmatmul.mubr.msk.f32.vlgmr.msra.gmra.mrb[0].mxu0 %vm67_vm1, %v61_v4  ;;  %449 = vmatmul.mubr.msk.f32.vlgmr.msra.gmra.mrb[0].mxu1 %vm67_vm1, %v62_v6 }
  0x3e   :  { %453 = vmatprep.mubr.msk.f32.mxu0 %vm602_vm0, %v601_v0  ;;  %458 = vmatprep.mubr.msk.f32.mxu1 %vm602_vm0, %v601_v0  ;;  %p551_p13 = por %p550_p12, %p549_p11 }
  0x3f   :  { %452 = vmatpush3.msra.mxu0 %v65_v23  ;;  %457 = vmatpush3.msra.mxu1 %v66_v24 }
  0x40   :  { %p552_p0 = pnand %p551_p13, %p545_p10 }
 0x110   :  { %v140_v7 = vpop.f32.mrb[0].mxu0  ;;  %v216_v8 = vpop.f32.mrb[0].mxu1 }
 0x111   :  { %v445_v9 = vpop.f32.mrb[1].mxu0  ;;  %v221_v10 = vsel %vm220_vm2, %v140_v7, -inf  ;;  %v450_v11 = vpop.f32.mrb[1].mxu1  ;;  %v224_v12 = vsel %vm220_vm2, %v216_v8, -inf }
 0x112   :  { %222 = vmax.xlane.f32.xlu0 %v221_v10 }
 0x116   :  { %225 = vmax.xlane.f32.xlu0 %v224_v12 }
 0x19f   :  { %v223_v13 = vpop.xlane.xlu0 %222 }
 0x1a0   :  { %v227_v14 = vsub.f32 %v140_v7, %v223_v13 }
 0x1a2   :  { %v229_v15 = vmul.f32 1.442695, %v227_v14 }
 0x1a3   :  { %v226_v16 = vpop.xlane.xlu0 %225 }
 0x1a4   :  { %470 = vpow2.f32 %v229_v15  ;;  %v228_v17 = vsub.f32 %v216_v8, %v226_v16 }
 0x1a6   :  { %v231_v18 = vmul.f32 1.442695, %v228_v17 }
 0x1a8   :  { %472 = vpow2.f32 %v231_v18 }
 0x1ae   :  { %v471_v19 = vpop.eup %470 }
 0x1af   :  { %v233_v20 = vsel %vm220_vm2, %v471_v19, 0.0 }
 0x1b0   :  { %234 = vadd.xlane.f32.xlu1 %v233_v20 }
 0x1b2   :  { %v473_v21 = vpop.eup %472 }
 0x1b3   :  { %v236_v22 = vsel %vm220_vm2, %v473_v21, 0.0 }
 0x1b4   :  { %237 = vadd.xlane.f32.xlu1 %v236_v22 }
 0x23d   :  { %v235_v25 = vpop.xlane.xlu1 %234 }
 0x23e   :  { %474 = vrcp.f32 %v235_v25 }
 0x241   :  { %v238_v26 = vpop.xlane.xlu1 %237 }
 0x242   :  { %476 = vrcp.f32 %v238_v26 }
 0x248   :  { %v475_v27 = vpop.eup %474 }
 0x249   :  { %v241_v28 = vmul.f32 %v475_v27, %v471_v19 }
 0x24b   :  { %243 = vst.msk [vmem:[#allocation9] sm:$0xff] %vm220_vm2, %v241_v28  ;;  %454 = vmatmul.mubr.msk.f32.vlgmr.msra.gmra.mrb[2].mxu0 %vm220_vm2, %v241_v28 }
 0x24c   :  { %v477_v29 = vpop.eup %476 }
 0x24d   :  { %v242_v30 = vmul.f32 %v477_v29, %v473_v21 }
 0x24f   :  { %244 = vst.msk [vmem:[#allocation9 + $0x8] sm:$0xff] %vm220_vm2, %v242_v30  ;;  %459 = vmatmul.mubr.msk.f32.vlgmr.msra.gmra.mrb[2].mxu1 %vm220_vm2, %v242_v30 }
 0x250   :  { %555 = shalt.err (!%p552_p0)
}
 0x251   :  { %s556_s5 = scalar_lea.hbm %s734_s4, 256 }
 0x252   :  { %p557_p1 = scmp.ne.s32.totalorder %s734_s4, %s556_s5  ;;  %p560_p2 = scmp.lt.u32.totalorder %s556_s5, %s734_s4 }
 0x254   :  { %p562_p3 = pnand %p560_p2, %p557_p1 }
 0x256   :  { %565 = shalt.err (!%p562_p3)
}
 0x257   :  { %416 = dma.vmem_to_hbm [thread:$0]  %s411_s25, 256, %s734_s4, [#allocation10], %s598_s27, %s598_s27, %s599_s28  }
 0x258   :  { %s604_s12 = smov [#allocation8]  }
 0x259   :  { %s398_s1 = sshll.u32 %s604_s12, 4  ;;  %s399_s1 = int_to_ptr.vmem [resolvable:$true] %s398_s1 }
 0x25a   :  { %s566_s13 = scalar_lea.vmem %s399_s1, 256  ;;  %p571_p5 = scmp.lt.s32.totalorder %s399_s1, %s399_s1 }
 0x25b   :  { %p567_p4 = scmp.ne.s32.totalorder %s399_s1, %s566_s13  ;;  %p572_p6 = scmp.lt.s32.totalorder %s566_s13, %s566_s13 }
 0x25d   :  { %p573_p7 = por %p572_p6, %p571_p5 }
 0x25f   :  { %p574_p8 = pnand %p573_p7, %p567_p4 }
 0x31e   :  { %v314_v31 = vpop.f32.mrb[2].mxu0 }
 0x31f   :  { %391 = vst.msk [vmem:[#allocation8] sm:$0xff] %vm67_vm1, %v314_v31  ;;  %v455_v32 = vpop.f32.mrb[3].mxu0 }
 0x322   :  { %v387_v33 = vpop.f32.mrb[2].mxu1 }
 0x323   :  { %392 = vst.msk [vmem:[#allocation8 + $0x8] sm:$0xff] %vm67_vm1, %v387_v33  ;;  %v460_v34 = vpop.f32.mrb[3].mxu1 }
 0x324   :  { %577 = shalt.err (!%p574_p8)
}
 0x325   :  { %s578_s15 = scalar_lea.hbm %s733_s3, 256 }
 0x326   :  { %p579_p9 = scmp.ne.s32.totalorder %s733_s3, %s578_s15  ;;  %p582_p10 = scmp.lt.u32.totalorder %s578_s15, %s733_s3 }
 0x328   :  { %p584_p11 = pnand %p582_p10, %p579_p9 }
 0x32a   :  { %587 = shalt.err (!%p584_p11)
}
 0x32b   :  { %404 = dma.vmem_to_hbm [thread:$0]  %s399_s1, 256, %s733_s3, [#allocation4], %s598_s27, %s598_s27, %s599_s28  }
 0x32c   :  { %592 = dma.done.wait [#allocation4], 256  }
 0x32d   :  { %593 = vsyncadd [#allocation4], 4294967040 }
 0x32e   :  { %594 = dma.done.wait [#allocation10], 256  }
 0x32f   :  { %595 = vsyncadd [#allocation10], 4294967040 }
 0x330   :  { %423 = vsyncpa [#allocation3], 1 }
 0x331   :  { %424 = vsyncpa [#allocation6], 1 }
 0x332   :  { %425 = vsyncpa [#allocation4], 1 }
 0x333   :  { %426 = vsyncpa [#allocation10], 1 }

</bundles_post_ra>
